<compile_context>
chip_gen: v5e
topology: v5e:2x2
jax: 0.10.0
libtpu: 0.0.40
codegen_flags: <defaults>
</compile_context>

<pallas_src>
import functools

import jax
import jax.numpy as jnp
from jax.experimental import pallas as pl
from jax.experimental.pallas import tpu as pltpu


def _round_up(v, m):
    return (v + m - 1) // m * m


def _lane_round(v):
    # 256-alignment matches v6e/v7x's 256x256 MXUs; 128 is enough for small
    # dims (and for v5e's 128x128 MXUs).
    return _round_up(v, 256) if v >= 256 else _round_up(v, 128)


def _vmem_capacity_bytes():
    try:
        return int(pltpu.get_tpu_info().vmem_capacity_bytes)
    except Exception:
        return 64 << 20  # conservative fallback (v7x-sized VMEM)


def _ffn_kernel(x_ref, w1_ref, b1_ref, w2_ref, b2_ref, o_ref, acc_ref):
    """One (row-tile, hidden-tile) step of the fused FFN.

    grid = (M_pad // TM, H_pad // TH); axis 0 is parallel over row tiles,
    axis 1 is the hidden-dim reduction accumulated into the f32 VMEM scratch.
    """
    h_idx = pl.program_id(1)

    @pl.when(h_idx == 0)
    def _():
        # Fold the second bias into the accumulator init (saves a full-tile
        # VPU add in the epilogue).
        acc_ref[...] = jnp.broadcast_to(b2_ref[...].astype(jnp.float32),
                                        acc_ref.shape)

    # First linear: [TM, E] @ [E, TH] -> f32 [TM, TH] on the MXU.
    h = jnp.dot(x_ref[...], w1_ref[...], preferred_element_type=jnp.float32)
    h = h + b1_ref[...]                                    # bias add in f32

    # tanh-GELU exactly as the reference module (note: 3.14, not pi).
    # c*(h + 0.044715*h^3) == c*h*(1 + 0.044715*h^2)  -> fewer VPU muls.
    c = jnp.sqrt(jnp.float32(2.0 / 3.14))
    h2 = h * h
    g = 0.5 * h * (1.0 + jnp.tanh(c * h * (1.0 + 0.044715 * h2)))

    # Second linear: accumulate this hidden tile's [TM, E] contribution.
    acc_ref[...] += jnp.dot(g.astype(w2_ref.dtype), w2_ref[...],
                            preferred_element_type=jnp.float32)

    @pl.when(h_idx == pl.num_programs(1) - 1)
    def _():
        o_ref[...] = acc_ref[...].astype(o_ref.dtype)


@functools.partial(jax.jit, static_argnames=("tm", "th", "compute_dtype"))
def feed_forward(x, w1, b1, w2, b2, *, tm=512, th=512, compute_dtype=None):
    """FeedForward(Linear -> tanh-GELU -> Linear).  x: [B, T, E] -> [B, T, E].

    compute_dtype: MXU operand dtype for x/W1/W2.  Defaults to bf16 when the
    input is f32 (f32 accumulation + f32 GELU always kept); pass jnp.float32
    to force full-precision operands (matches PyTorch numerics closely).
    """
    orig_dtype = x.dtype
    B, T, E = x.shape
    Ein, H = w1.shape
    assert Ein == E and w2.shape == (H, E)

    if compute_dtype is None:
        cdt = jnp.bfloat16 if orig_dtype == jnp.float32 else jnp.dtype(orig_dtype)
    else:
        cdt = jnp.dtype(compute_dtype)
    cbytes = jnp.dtype(cdt).itemsize
    obytes = jnp.dtype(orig_dtype).itemsize

    M = B * T
    E_pad = _lane_round(E)

    # ---- row tile -----------------------------------------------------------
    row_align = 16 if cbytes == 2 else 8
    tm_eff = min(tm, _round_up(M, row_align))
    # Megacore (v7x has 2 TensorCores): ensure >= 2 parallel row tiles whenever
    # the token count allows it, so both cores get work.
    if _round_up(M, tm_eff) // tm_eff < 2 and tm_eff >= 2 * row_align:
        tm_eff = _round_up(-(-M // 2), row_align)

    # ---- hidden tile / chip-aware VMEM budget -------------------------------
    vmem_budget = int(0.85 * _vmem_capacity_bytes())  # headroom for compiler scratch

    def vmem_need(tm_, th_):
        return (2 * tm_ * E_pad * cbytes        # x tile (double-buffered)
                + 2 * E_pad * th_ * cbytes      # W1 tile
                + 2 * th_ * E_pad * cbytes      # W2 tile
                + 2 * (th_ + E_pad) * 4         # biases (f32)
                + 2 * tm_ * E_pad * obytes      # out tile
                + tm_ * E_pad * 4               # f32 accumulator scratch
                + 2 * tm_ * th_ * 4)            # live h / g intermediates (f32)

    H_min = _lane_round(H)
    if vmem_need(tm_eff, H_min) <= vmem_budget:
        # Weights fully VMEM-resident: single hidden tile; W1/W2 block indices
        # are constant across the whole grid, so they are DMA'd exactly once.
        th_eff = H_min
    else:
        th_eff = min(_round_up(th, 128), H_min)
        while vmem_need(tm_eff, th_eff) > vmem_budget and th_eff > 256:
            th_eff = max(256, _round_up(th_eff // 2, 128))
        while vmem_need(tm_eff, th_eff) > vmem_budget and tm_eff > row_align:
            tm_eff = max(row_align, _round_up(tm_eff // 2, row_align))
        # TODO(synk): for very large E on v7x (64 MiB VMEM) this may still not
        # fit; a third grid axis tiling E (output-N of the 2nd matmul) would be
        # needed in that regime.

    M_pad = _round_up(M, tm_eff)
    H_pad = _round_up(H, th_eff)
    n_row = M_pad // tm_eff
    n_h = H_pad // th_eff

    # ---- pad + cast operands (no-ops when already aligned / already cdt) ----
    # Zero padding is exact through both matmuls and GELU(0) == 0; padded rows
    # are sliced off at the end.
    # NOTE: in a real model, pre-pad / pre-cast the weights once outside the
    # per-step forward instead of per call.
    x2d = jnp.pad(x.reshape(M, E).astype(cdt), ((0, M_pad - M), (0, E_pad - E)))
    w1p = jnp.pad(w1.astype(cdt), ((0, E_pad - E), (0, H_pad - H)))
    w2p = jnp.pad(w2.astype(cdt), ((0, H_pad - H), (0, E_pad - E)))
    b1p = jnp.pad(b1.reshape(1, H).astype(jnp.float32), ((0, 0), (0, H_pad - H)))
    b2p = jnp.pad(b2.reshape(1, E).astype(jnp.float32), ((0, 0), (0, E_pad - E)))

    # W1/W2 are fetched once if resident (n_h == 1), else once per row tile.
    weight_passes = 1 if n_h == 1 else n_row
    cost = pl.CostEstimate(
        flops=4 * M_pad * E_pad * H_pad,                 # two matmuls
        transcendentals=M_pad * H_pad,                   # tanh per hidden element
        bytes_accessed=(M_pad * E_pad * cbytes           # x
                        + weight_passes * 2 * E_pad * H_pad * cbytes   # W1 + W2
                        + weight_passes * (H_pad + E_pad) * 4          # biases
                        + M_pad * E_pad * obytes),       # out
    )

    vmem_limit = int(min(max(vmem_need(tm_eff, th_eff) + (16 << 20), 32 << 20),
                         vmem_budget))

    out2d = pl.pallas_call(
        _ffn_kernel,
        out_shape=jax.ShapeDtypeStruct((M_pad, E_pad), orig_dtype),
        grid_spec=pltpu.PrefetchScalarGridSpec(
            num_scalar_prefetch=0,
            grid=(n_row, n_h),
            in_specs=[
                pl.BlockSpec((tm_eff, E_pad), lambda i, h: (i, 0)),   # x rows (resident over h)
                pl.BlockSpec((E_pad, th_eff), lambda i, h: (0, h)),   # W1 hidden tile
                pl.BlockSpec((1, th_eff),     lambda i, h: (0, h)),   # b1 hidden tile
                pl.BlockSpec((th_eff, E_pad), lambda i, h: (h, 0)),   # W2 hidden tile
                pl.BlockSpec((1, E_pad),      lambda i, h: (0, 0)),   # b2 (resident)
            ],
            out_specs=pl.BlockSpec((tm_eff, E_pad), lambda i, h: (i, 0)),
            scratch_shapes=[pltpu.VMEM((tm_eff, E_pad), jnp.float32)],
        ),
        compiler_params=pltpu.CompilerParams(
            dimension_semantics=("parallel", "arbitrary"),
            vmem_limit_bytes=vmem_limit,
        ),
        cost_estimate=cost,
    )(x2d, w1p, b1p, w2p, b2p)

    return out2d[:M, :E].reshape(B, T, E)


def _reference(x, w1, b1, w2, b2):
    h = x @ w1 + b1
    c = jnp.sqrt(jnp.float32(2.0 / 3.14))
    g = 0.5 * h * (1.0 + jnp.tanh(c * (h + 0.044715 * h ** 3)))
    return g @ w2 + b2


if __name__ == "__main__":
    # cfg = {'emb_dim': 32}; small shapes: batch=2, seq=8.
    B, T, E = 2, 8, 32
    H = 4 * E

    key = jax.random.PRNGKey(0)
    kx, k1, kb1, k2, kb2 = jax.random.split(key, 5)

    x = jax.random.normal(kx, (B, T, E), dtype=jnp.float32)
    # Deterministic init mimicking nn.Linear's uniform(-1/sqrt(fan_in), ...).
    w1 = jax.random.uniform(k1, (E, H), jnp.float32, -1.0, 1.0) / jnp.sqrt(E)
    b1 = jax.random.uniform(kb1, (1, H), jnp.float32, -1.0, 1.0) / jnp.sqrt(E)
    w2 = jax.random.uniform(k2, (H, E), jnp.float32, -1.0, 1.0) / jnp.sqrt(H)
    b2 = jax.random.uniform(kb2, (1, E), jnp.float32, -1.0, 1.0) / jnp.sqrt(H)

    ref = _reference(x.reshape(-1, E), w1, b1, w2, b2).reshape(B, T, E)

    # Default fast path: bf16 MXU operands, f32 accumulation + f32 GELU.
    out = feed_forward(x, w1, b1, w2, b2)
    jax.block_until_ready(out)
    assert out.shape == (B, T, E)
    assert out.dtype == x.dtype
    assert jnp.allclose(out, ref, atol=5e-2, rtol=5e-2), \
        float(jnp.max(jnp.abs(out - ref)))

    # Explicit full-precision path (matches the PyTorch module numerics).
    out_f32 = feed_forward(x, w1, b1, w2, b2, compute_dtype=jnp.float32)
    jax.block_until_ready(out_f32)
    assert jnp.allclose(out_f32, ref, atol=1e-4, rtol=1e-4), \
        float(jnp.max(jnp.abs(out_f32 - ref)))

    print("KERNEL_OK")
</pallas_src>

<mosaic_0001>
module attributes {stable_mosaic.version = 11 : i64} {
  func.func @_ffn_kernel(%arg0: i32, %arg1: i32, %arg2: memref<16x128xbf16, #tpu.memory_space<vmem>>, %arg3: memref<128x128xbf16, #tpu.memory_space<vmem>>, %arg4: memref<1x128xf32, #tpu.memory_space<vmem>>, %arg5: memref<128x128xbf16, #tpu.memory_space<vmem>>, %arg6: memref<1x128xf32, #tpu.memory_space<vmem>>, %arg7: memref<16x128xf32, #tpu.memory_space<vmem>>, %arg8: memref<16x128xf32, #tpu.memory_space<vmem>>) attributes {dimension_semantics = [#tpu.dimension_semantics<parallel>, #tpu.dimension_semantics<arbitrary>], iteration_bounds = array<i64: 1, 1>, scalar_prefetch = 0 : i64, scratch_operands = 1 : i64, tpu.core_type = #tpu.core_type<tc>, window_params = [{transform_indices = @transform_0, window_bounds = array<i64: 16, 128>}, {transform_indices = @transform_1, window_bounds = array<i64: 128, 128>}, {transform_indices = @transform_2, window_bounds = array<i64: 1, 128>}, {transform_indices = @transform_3, window_bounds = array<i64: 128, 128>}, {pipeline_mode = #tpu.pipeline_mode<synchronous>, transform_indices = @transform_4, window_bounds = array<i64: 1, 128>}, {transform_indices = @transform_5, window_bounds = array<i64: 16, 128>}]} {
    %c0_i32 = arith.constant 0 : i32
    %0 = arith.cmpi eq, %arg1, %c0_i32 : i32
    %1 = arith.extui %0 : i1 to i32
    %c0_i32_0 = arith.constant 0 : i32
    %2 = arith.cmpi ne, %1, %c0_i32_0 : i32
    scf.if %2 {
      %c0_20 = arith.constant 0 : index
      %c0_21 = arith.constant 0 : index
      %33 = vector.load %arg6[%c0_20, %c0_21] : memref<1x128xf32, #tpu.memory_space<vmem>>, vector<1x128xf32>
      %34 = vector.shape_cast %33 : vector<1x128xf32> to vector<1x128xf32>
      %35 = vector.broadcast %34 : vector<1x128xf32> to vector<16x128xf32>
      %c0_22 = arith.constant 0 : index
      %c0_23 = arith.constant 0 : index
      %36 = vector.load %arg8[%c0_22, %c0_23] : memref<16x128xf32, #tpu.memory_space<vmem>>, vector<16x128xf32>
      tpu.vector_store %arg8[%c0_22, %c0_23], %35 {strides = array<i32>} : memref<16x128xf32, #tpu.memory_space<vmem>>, vector<16x128xf32>,
    } else {
    }
    %c0 = arith.constant 0 : index
    %c0_1 = arith.constant 0 : index
    %3 = vector.load %arg2[%c0, %c0_1] : memref<16x128xbf16, #tpu.memory_space<vmem>>, vector<16x128xbf16>
    %c0_2 = arith.constant 0 : index
    %c0_3 = arith.constant 0 : index
    %4 = vector.load %arg3[%c0_2, %c0_3] : memref<128x128xbf16, #tpu.memory_space<vmem>>, vector<128x128xbf16>
    %cst = arith.constant dense<0.000000e+00> : vector<16x128xf32>
    %5 = tpu.matmul %3, %4, %cst {dimension_numbers = #tpu.dot_dimension_numbers<[1], [0], [0], [1], [0, 0, 1, 1], [], []>} : vector<16x128xbf16>, vector<128x128xbf16>, vector<16x128xf32> -> vector<16x128xf32>
    %c0_4 = arith.constant 0 : index
    %c0_5 = arith.constant 0 : index
    %6 = vector.load %arg4[%c0_4, %c0_5] : memref<1x128xf32, #tpu.memory_space<vmem>>, vector<1x128xf32>
    %7 = vector.broadcast %6 : vector<1x128xf32> to vector<16x128xf32>
    %8 = arith.addf %5, %7 : vector<16x128xf32>
    %cst_6 = arith.constant 0.636942684 : f32
    %9 = math.sqrt %cst_6 : f32
    %10 = arith.mulf %8, %8 : vector<16x128xf32>
    %cst_7 = arith.constant 5.000000e-01 : f32
    %11 = vector.broadcast %cst_7 : f32 to vector<16x128xf32>
    %12 = arith.mulf %11, %8 : vector<16x128xf32>
    %13 = vector.broadcast %9 : f32 to vector<16x128xf32>
    %14 = arith.mulf %13, %8 : vector<16x128xf32>
    %cst_8 = arith.constant 4.471500e-02 : f32
    %15 = vector.broadcast %cst_8 : f32 to vector<16x128xf32>
    %16 = arith.mulf %15, %10 : vector<16x128xf32>
    %cst_9 = arith.constant 1.000000e+00 : f32
    %17 = vector.broadcast %cst_9 : f32 to vector<16x128xf32>
    %18 = arith.addf %17, %16 : vector<16x128xf32>
    %19 = arith.mulf %14, %18 : vector<16x128xf32>
    %20 = math.tanh %19 : vector<16x128xf32>
    %cst_10 = arith.constant 1.000000e+00 : f32
    %21 = vector.broadcast %cst_10 : f32 to vector<16x128xf32>
    %22 = arith.addf %21, %20 : vector<16x128xf32>
    %23 = arith.mulf %12, %22 : vector<16x128xf32>
    %c0_11 = arith.constant 0 : index
    %c0_12 = arith.constant 0 : index
    %24 = vector.load %arg8[%c0_11, %c0_12] : memref<16x128xf32, #tpu.memory_space<vmem>>, vector<16x128xf32>
    %25 = arith.truncf %23 : vector<16x128xf32> to vector<16x128xbf16>
    %c0_13 = arith.constant 0 : index
    %c0_14 = arith.constant 0 : index
    %26 = vector.load %arg5[%c0_13, %c0_14] : memref<128x128xbf16, #tpu.memory_space<vmem>>, vector<128x128xbf16>
    %cst_15 = arith.constant dense<0.000000e+00> : vector<16x128xf32>
    %27 = tpu.matmul %25, %26, %cst_15 {dimension_numbers = #tpu.dot_dimension_numbers<[1], [0], [0], [1], [0, 0, 1, 1], [], []>} : vector<16x128xbf16>, vector<128x128xbf16>, vector<16x128xf32> -> vector<16x128xf32>
    %28 = arith.addf %24, %27 : vector<16x128xf32>
    %c0_16 = arith.constant 0 : index
    %c0_17 = arith.constant 0 : index
    %29 = vector.load %arg8[%c0_16, %c0_17] : memref<16x128xf32, #tpu.memory_space<vmem>>, vector<16x128xf32>
    tpu.vector_store %arg8[%c0_16, %c0_17], %28 {strides = array<i32>} : memref<16x128xf32, #tpu.memory_space<vmem>>, vector<16x128xf32>,
    %c0_i32_18 = arith.constant 0 : i32
    %30 = arith.cmpi eq, %arg1, %c0_i32_18 : i32
    %31 = arith.extui %30 : i1 to i32
    %c0_i32_19 = arith.constant 0 : i32
    %32 = arith.cmpi ne, %31, %c0_i32_19 : i32
    scf.if %32 {
      %c0_20 = arith.constant 0 : index
      %c0_21 = arith.constant 0 : index
      %33 = vector.load %arg8[%c0_20, %c0_21] : memref<16x128xf32, #tpu.memory_space<vmem>>, vector<16x128xf32>
      %c0_22 = arith.constant 0 : index
      %c0_23 = arith.constant 0 : index
      %34 = vector.load %arg7[%c0_22, %c0_23] : memref<16x128xf32, #tpu.memory_space<vmem>>, vector<16x128xf32>
      tpu.vector_store %arg7[%c0_22, %c0_23], %33 {strides = array<i32>} : memref<16x128xf32, #tpu.memory_space<vmem>>, vector<16x128xf32>,
    } else {
    }
    return
  }
  func.func @transform_0(%arg0: i32, %arg1: i32) -> (i32, i32) {
    %c0_i32 = arith.constant 0 : i32
    %c0_i32_0 = arith.constant 0 : i32
    return %arg0, %c0_i32 : i32, i32
  }
  func.func @transform_1(%arg0: i32, %arg1: i32) -> (i32, i32) {
    %c0_i32 = arith.constant 0 : i32
    %c0_i32_0 = arith.constant 0 : i32
    return %c0_i32, %arg1 : i32, i32
  }
  func.func @transform_2(%arg0: i32, %arg1: i32) -> (i32, i32) {
    %c0_i32 = arith.constant 0 : i32
    %c0_i32_0 = arith.constant 0 : i32
    return %c0_i32, %arg1 : i32, i32
  }
  func.func @transform_3(%arg0: i32, %arg1: i32) -> (i32, i32) {
    %c0_i32 = arith.constant 0 : i32
    %c0_i32_0 = arith.constant 0 : i32
    return %arg1, %c0_i32 : i32, i32
  }
  func.func @transform_4(%arg0: i32, %arg1: i32) -> (i32, i32) {
    %c0_i32 = arith.constant 0 : i32
    %c0_i32_0 = arith.constant 0 : i32
    %c0_i32_1 = arith.constant 0 : i32
    return %c0_i32, %c0_i32_0 : i32, i32
  }
  func.func @transform_5(%arg0: i32, %arg1: i32) -> (i32, i32) {
    %c0_i32 = arith.constant 0 : i32
    %c0_i32_0 = arith.constant 0 : i32
    return %arg0, %c0_i32 : i32, i32
  }
}

</mosaic_0001>

<bundles_post_ra>
// kernel: feed_forward.1
= control target key start
LH: loop header
LB: loop body
LE: loop exit
PB: predicated region body
PF: predicated region fallthrough
CT: control target
= control target key end

     0   :  { %s418_s1 = inlined_call_operand.vmem [shape: bf16[128,128], index: 1, kind: input, shape index: {}]   ;;  %s419_s2 = inlined_call_operand.vmem [shape: f32[1,128], index: 2, kind: input, shape index: {}]   ;;  %s420_s0 = inlined_call_operand.vmem [shape: bf16[16,128], index: 0, kind: input, shape index: {}]   ;;  %s421_s4 = inlined_call_operand.vmem [shape: f32[1,128], index: 4, kind: input, shape index: {}]   ;;  %s422_s3 = inlined_call_operand.vmem [shape: bf16[128,128], index: 3, kind: input, shape index: {}]   ;;  %s423_s5 = inlined_call_operand.vmem [shape: f32[16,128], index: 5, kind: output, shape index: {}]  }
   0x1   :  { %v310_v0 = vld [vmem:[%s418_s1 + $0x38] sm:$0xff]  ;;  %v309_v1 = vld [vmem:[%s418_s1 + $0x30] sm:$0xff]  ;;  %v308_v2 = vld [vmem:[%s418_s1 + $0x28] sm:$0xff] }
   0x2   :  { %106 = vmatpush.bf16.msra.mxu0 %v310_v0  ;;  %v307_v3 = vld [vmem:[%s418_s1 + $0x20] sm:$0xff]  ;;  %v306_v4 = vld [vmem:[%s418_s1 + $0x18] sm:$0xff]  ;;  %v305_v5 = vld [vmem:[%s418_s1 + $0x10] sm:$0xff] }
   0x3   :  { %v304_v6 = vld [vmem:[%s418_s1 + $0x8] sm:$0xff]  ;;  %v303_v7 = vld [vmem:[%s418_s1] sm:$0xff]  ;;  %v318_v9 = vld [vmem:[%s422_s3 + $0x38] sm:$0xff] }
   0x4   :  { %v302_v8 = vld [vmem:[%s420_s0] sm:$0xff]  ;;  %205 = vmatpush.bf16.msra.mxu1 %v318_v9  ;;  %v317_v10 = vld [vmem:[%s422_s3 + $0x30] sm:$0xff]  ;;  %v316_v11 = vld [vmem:[%s422_s3 + $0x28] sm:$0xff] }
   0x5   :  { %v315_v12 = vld [vmem:[%s422_s3 + $0x20] sm:$0xff]  ;;  %v314_v13 = vld [vmem:[%s422_s3 + $0x18] sm:$0xff]  ;;  %v313_v14 = vld [vmem:[%s422_s3 + $0x10] sm:$0xff] }
   0x6   :  { %107 = vmatpush.bf16.msra.mxu0 %v309_v1  ;;  %v312_v15 = vld [vmem:[%s422_s3 + $0x8] sm:$0xff]  ;;  %v311_v16 = vld [vmem:[%s422_s3] sm:$0xff] }
   0x7   :  { %v319_v17 = vld [vmem:[%s419_s2] ss:$0 sm:$0xff] }
   0x8   :  { %206 = vmatpush.bf16.msra.mxu1 %v317_v10  ;;  %v320_v41 = vld [vmem:[%s421_s4] ss:$0 sm:$0xff] }
   0xa   :  { %108 = vmatpush.bf16.msra.mxu0 %v308_v2 }
   0xc   :  { %207 = vmatpush.bf16.msra.mxu1 %v316_v11 }
   0xe   :  { %109 = vmatpush.bf16.msra.mxu0 %v307_v3 }
  0x10   :  { %208 = vmatpush.bf16.msra.mxu1 %v315_v12 }
  0x12   :  { %110 = vmatpush.bf16.msra.mxu0 %v306_v4 }
  0x14   :  { %209 = vmatpush.bf16.msra.mxu1 %v314_v13 }
  0x16   :  { %111 = vmatpush.bf16.msra.mxu0 %v305_v5 }
  0x18   :  { %210 = vmatpush.bf16.msra.mxu1 %v313_v14 }
  0x1a   :  { %112 = vmatpush.bf16.msra.mxu0 %v304_v6 }
  0x1c   :  { %211 = vmatpush.bf16.msra.mxu1 %v312_v15 }
  0x1e   :  { %113 = vmatpush.bf16.msra.mxu0 %v303_v7 }
  0x20   :  { %212 = vmatpush.bf16.msra.mxu1 %v311_v16 }
  0x21   :  { %114 = vmatmul.bf16.vlgmr.msra.gmra.mxu0 %v302_v8 }
  0x9e   :  { %v115_v18 = vpop.f32.mrf.mxu0 }
  0x9f   :  { %v116_v19 = vadd.f32 %v319_v17, %v115_v18 }
  0xa1   :  { %v120_v20 = vmul.f32 %v116_v19, %v116_v19  ;;  %v124_v24 = vmul.f32 0.7980869, %v116_v19  ;;  %v122_v35 = vmul.f32 0.5, %v116_v19 }
  0xa3   :  { %v126_v21 = vmul.f32 0.044715, %v120_v20 }
  0xa5   :  { %v128_v22 = vadd.f32 1.0, %v126_v21 }
  0xa6   :  { %v117_v23 = vpop.f32.mrf.mxu0 }
  0xa7   :  { %v118_v25 = vadd.f32 %v319_v17, %v117_v23  ;;  %v130_v26 = vmul.f32 %v128_v22, %v124_v24 }
  0xa9   :  { %v121_v27 = vmul.f32 %v118_v25, %v118_v25  ;;  %v125_v29 = vmul.f32 0.7980869, %v118_v25  ;;  %321 = vtanh.f32 %v130_v26  ;;  %v123_v36 = vmul.f32 0.5, %v118_v25 }
  0xab   :  { %v127_v28 = vmul.f32 0.044715, %v121_v27 }
  0xad   :  { %v129_v30 = vadd.f32 1.0, %v127_v28 }
  0xaf   :  { %v131_v31 = vmul.f32 %v129_v30, %v125_v29  ;;  %v322_v32 = vpop.eup %321 }
  0xb0   :  { %v134_v33 = vadd.f32 1.0, %v322_v32 }
  0xb1   :  { %323 = vtanh.f32 %v131_v31 }
  0xb2   :  { %v136_v38 = vmul.f32 %v134_v33, %v122_v35 }
  0xb7   :  { %v324_v34 = vpop.eup %323 }
  0xb8   :  { %v135_v37 = vadd.f32 1.0, %v324_v34 }
  0xba   :  { %v137_v39 = vmul.f32 %v135_v37, %v123_v36 }
  0xbc   :  { %v140_v40 = vpack.c.bf16 %v137_v39, %v136_v38 }
  0xbe   :  { %213 = vmatmul.bf16.vlgmr.msra.gmra.mxu1 %v140_v40 }
 0x13b   :  { %v214_v42 = vpop.f32.mrf.mxu1 }
 0x13c   :  { %v219_v43 = vadd.f32 %v320_v41, %v214_v42 }
 0x13e   :  { %228 = vst [vmem:[%s423_s5] sm:$0xff] %v219_v43 }
 0x143   :  { %v216_v44 = vpop.f32.mrf.mxu1 }
 0x144   :  { %v220_v45 = vadd.f32 %v320_v41, %v216_v44 }
 0x146   :  { %229 = vst [vmem:[%s423_s5 + $0x8] sm:$0xff] %v220_v45 }

</bundles_post_ra>
